<compile_context>
chip_gen: v5e
topology: v5e:2x2
jax: 0.10.0
libtpu: 0.0.40
codegen_flags: <defaults>
</compile_context>

<pallas_src>
import jax
import jax.numpy as jnp
from jax.experimental import pallas as pl
from jax.experimental.pallas import tpu as pltpu


def decoder_kernel(
    emb_ref, h_ref, enc_ref,
    aWh_ref, aWe_ref, ab_ref, v_ref,
    Wih_e_ref, Wih_w_ref, Whh_ref, bi_ref, bh_ref,
    fcW_ref, fcb_ref,
    pred_ref, hout_ref,
    x_scratch,
):
    f32 = jnp.float32
    bf16 = jnp.bfloat16
    j = pl.program_id(0)

    # ---- attention + single GRU step: only on the first vocab tile ----
    @pl.when(j == 0)
    def _():
        emb = emb_ref[...]                 # [B, E]  f32
        h = h_ref[...]                     # [B, D]  f32
        enc = enc_ref[...]                 # [B, S, 2H] f32
        B, S, H2 = enc.shape
        D = h.shape[-1]

        emb16 = emb.astype(bf16)
        h16 = h.astype(bf16)
        enc16 = enc.astype(bf16)

        # attention: energy = tanh([h ; enc] @ Wa + ba); score = energy . v
        h_term = jnp.dot(h16, aWh_ref[...], preferred_element_type=f32) + ab_ref[...]
        e_term = jnp.dot(enc16.reshape(B * S, H2), aWe_ref[...],
                         preferred_element_type=f32).reshape(B, S, D)
        energy = jnp.tanh(h_term[:, None, :] + e_term)          # [B, S, D]
        scores = jnp.sum(energy * v_ref[...], axis=-1)           # [B, S]
        scores = scores - jnp.max(scores, axis=-1, keepdims=True)
        exp_s = jnp.exp(scores)
        inv = pl.reciprocal(jnp.sum(exp_s, axis=-1, keepdims=True), approx=True)
        a = exp_s * inv                                           # softmax over S

        # weighted context  (S is small here; batched dot_general for large S)
        weighted = jnp.sum(a[:, :, None] * enc, axis=1)           # [B, 2H] f32
        w16 = weighted.astype(bf16)

        # fused GRU gates: gi = [emb|weighted] @ W_ih + b_ih ; gh = h @ W_hh + b_hh
        gi = (jnp.dot(emb16, Wih_e_ref[...], preferred_element_type=f32)
              + jnp.dot(w16, Wih_w_ref[...], preferred_element_type=f32)
              + bi_ref[...])                                      # [B, 3D]
        gh = jnp.dot(h16, Whh_ref[...], preferred_element_type=f32) + bh_ref[...]
        r = jax.nn.sigmoid(gi[:, 0:D] + gh[:, 0:D])
        z = jax.nn.sigmoid(gi[:, D:2 * D] + gh[:, D:2 * D])
        n = jnp.tanh(gi[:, 2 * D:] + r * gh[:, 2 * D:])
        h_new = (1.0 - z) * n + z * h                             # [B, D]

        hout_ref[...] = h_new.astype(hout_ref.dtype)
        # concatenated fc_out operand, kept for all vocab tiles
        x_scratch[...] = jnp.concatenate(
            [h_new, weighted, emb], axis=-1).astype(x_scratch.dtype)

    # ---- fc_out vocab tile: one matmul of [h_new | weighted | emb] @ W_tile ----
    pred_ref[...] = (
        jnp.dot(x_scratch[...], fcW_ref[...], preferred_element_type=f32)
        + fcb_ref[...]
    ).astype(pred_ref.dtype)


def decoder_forward(input_ids, hidden, encoder_outputs, p, *, tile_v=128):
    """input_ids: [B] int32; hidden: [B, D]; encoder_outputs: [S, B, 2H] (PyTorch layout)."""
    emb = p["emb_table"][input_ids]                  # embedding gather (glue); dropout = identity
    enc = jnp.transpose(encoder_outputs, (1, 0, 2))  # -> [B, S, 2H]  (hoist out of decode loops)
    B, D = hidden.shape
    S, H2 = enc.shape[1], enc.shape[2]
    E = emb.shape[-1]
    V = p["fc_b"].shape[-1]
    K = D + H2 + E

    tile_v = min(tile_v, V)
    if V % tile_v != 0:
        tile_v = V                                  # fall back to a single full-width tile
    nv = V // tile_v

    def full_spec(shape):
        n = len(shape)
        return pl.BlockSpec(shape, lambda j: (0,) * n)

    ins = (
        emb, hidden, enc,
        p["attn_Wh"], p["attn_We"], p["attn_b"], p["attn_v"],
        p["Wih_e"], p["Wih_w"], p["Whh"], p["b_ih"], p["b_hh"],
        p["fc_W"], p["fc_b"],
    )
    in_specs = [
        full_spec((B, E)), full_spec((B, D)), full_spec((B, S, H2)),
        full_spec((D, D)), full_spec((H2, D)), full_spec((1, D)), full_spec((1, D)),
        full_spec((E, 3 * D)), full_spec((H2, 3 * D)), full_spec((D, 3 * D)),
        full_spec((1, 3 * D)), full_spec((1, 3 * D)),
        pl.BlockSpec((K, tile_v), lambda j: (0, j)),     # fc weight: pipelined over V
        pl.BlockSpec((1, tile_v), lambda j: (0, j)),     # fc bias
    ]
    out_specs = [
        pl.BlockSpec((B, tile_v), lambda j: (0, j)),     # prediction tile (lane-dense)
        pl.BlockSpec((B, D), lambda j: (0, 0)),          # new hidden (resident)
    ]

    pred, h_new = pl.pallas_call(
        decoder_kernel,
        out_shape=(jax.ShapeDtypeStruct((B, V), jnp.float32),
                   jax.ShapeDtypeStruct((B, D), jnp.float32)),
        grid_spec=pltpu.PrefetchScalarGridSpec(
            num_scalar_prefetch=0,
            grid=(nv,),
            in_specs=in_specs,
            out_specs=out_specs,
            scratch_shapes=[pltpu.VMEM((B, K), jnp.bfloat16)],
        ),
        # j==0 computes state consumed by j>0 via scratch -> axis must be "arbitrary"
        compiler_params=pltpu.CompilerParams(dimension_semantics=("arbitrary",)),
    )(*ins)
    return pred, h_new


def init_params(key, V, E, enc_hid, D):
    H2 = 2 * enc_hid
    ks = jax.random.split(key, 10)
    bf16 = jnp.bfloat16

    def w(k, shape, scale=0.1):
        return (scale * jax.random.normal(k, shape)).astype(jnp.float32)

    # attention Linear(D + 2H, D): input order [hidden | enc_out] (transposed to (in,out))
    attn_W = w(ks[1], (D + H2, D))
    # GRU weight_ih [3D, E+2H] (gate order r,z,n), input order [embedded | weighted]; transposed
    W_ih_T = w(ks[4], (E + H2, 3 * D))
    W_hh_T = w(ks[5], (D, 3 * D))
    b_ih = w(ks[6], (1, 3 * D))
    b_hh = w(ks[7], (1, 3 * D))
    # fc_out Linear(D + 2H + E, V): input order [output | weighted | embedded]; transposed
    fc_W = w(ks[8], (D + H2 + E, V))

    return dict(
        emb_table=w(ks[0], (V, E)),
        attn_Wh=attn_W[:D, :].astype(bf16),
        attn_We=attn_W[D:, :].astype(bf16),
        attn_b=w(ks[2], (1, D)),
        attn_v=w(ks[3], (1, D)),
        Wih_e=W_ih_T[:E, :].astype(bf16),
        Wih_w=W_ih_T[E:, :].astype(bf16),
        Whh=W_hh_T.astype(bf16),
        b_ih=b_ih, b_hh=b_hh,
        fc_W=fc_W.astype(bf16),
        fc_b=w(ks[9], (1, V)),
    )


def decoder_ref(input_ids, hidden, encoder_outputs, p):
    """Pure-JAX reference mirroring the PyTorch forward (eval mode)."""
    f = lambda x: x.astype(jnp.float32)
    emb = p["emb_table"][input_ids]
    enc = jnp.transpose(encoder_outputs, (1, 0, 2))
    h = hidden
    D = h.shape[-1]
    energy = jnp.tanh((h @ f(p["attn_Wh"]))[:, None, :] + enc @ f(p["attn_We"]) + p["attn_b"])
    scores = jnp.sum(energy * p["attn_v"], axis=-1)
    a = jax.nn.softmax(scores, axis=-1)
    weighted = jnp.einsum("bs,bse->be", a, enc)
    gi = emb @ f(p["Wih_e"]) + weighted @ f(p["Wih_w"]) + p["b_ih"]
    gh = h @ f(p["Whh"]) + p["b_hh"]
    r = jax.nn.sigmoid(gi[:, 0:D] + gh[:, 0:D])
    z = jax.nn.sigmoid(gi[:, D:2 * D] + gh[:, D:2 * D])
    n = jnp.tanh(gi[:, 2 * D:] + r * gh[:, 2 * D:])
    h_new = (1.0 - z) * n + z * h
    x = jnp.concatenate([h_new, weighted, emb], axis=-1)
    pred = x @ f(p["fc_W"]) + p["fc_b"]
    return pred, h_new


if __name__ == "__main__":
    # small synthetic shapes consistent with the module (V a multiple of the 128-lane tile)
    V, E, enc_hid, D = 256, 16, 16, 32     # output_dim, emb_dim, enc_hid_dim, dec_hid_dim
    S, B = 8, 8                            # src_len, batch (B=8 -> sublane aligned)

    key = jax.random.PRNGKey(0)
    kp, k1, k2, k3 = jax.random.split(key, 4)
    params = init_params(kp, V, E, enc_hid, D)

    input_ids = jax.random.randint(k1, (B,), 0, V, dtype=jnp.int32)
    hidden = (0.1 * jax.random.normal(k2, (B, D))).astype(jnp.float32)
    encoder_outputs = (0.1 * jax.random.normal(k3, (S, B, 2 * enc_hid))).astype(jnp.float32)

    pred, h_new = decoder_forward(input_ids, hidden, encoder_outputs, params)
    jax.block_until_ready((pred, h_new))

    pred_r, h_r = decoder_ref(input_ids, hidden, encoder_outputs, params)
    assert pred.shape == (B, V) and h_new.shape == (B, D)
    assert jnp.allclose(pred, pred_r, atol=2e-2, rtol=2e-2)
    assert jnp.allclose(h_new, h_r, atol=2e-2, rtol=2e-2)
    print("KERNEL_OK")
</pallas_src>

<mosaic_0001>
module attributes {stable_mosaic.version = 11 : i64} {
  func.func @decoder_kernel(%arg0: i32, %arg1: memref<8x16xf32, #tpu.memory_space<vmem>>, %arg2: memref<8x32xf32, #tpu.memory_space<vmem>>, %arg3: memref<8x8x32xf32, #tpu.memory_space<vmem>>, %arg4: memref<32x32xbf16, #tpu.memory_space<vmem>>, %arg5: memref<32x32xbf16, #tpu.memory_space<vmem>>, %arg6: memref<1x32xf32, #tpu.memory_space<vmem>>, %arg7: memref<1x32xf32, #tpu.memory_space<vmem>>, %arg8: memref<16x96xbf16, #tpu.memory_space<vmem>>, %arg9: memref<32x96xbf16, #tpu.memory_space<vmem>>, %arg10: memref<32x96xbf16, #tpu.memory_space<vmem>>, %arg11: memref<1x96xf32, #tpu.memory_space<vmem>>, %arg12: memref<1x96xf32, #tpu.memory_space<vmem>>, %arg13: memref<80x128xbf16, #tpu.memory_space<vmem>>, %arg14: memref<1x128xf32, #tpu.memory_space<vmem>>, %arg15: memref<8x128xf32, #tpu.memory_space<vmem>>, %arg16: memref<8x32xf32, #tpu.memory_space<vmem>>, %arg17: memref<8x80xbf16, #tpu.memory_space<vmem>>) attributes {dimension_semantics = [#tpu.dimension_semantics<arbitrary>], iteration_bounds = array<i64: 2>, scalar_prefetch = 0 : i64, scratch_operands = 1 : i64, tpu.core_type = #tpu.core_type<tc>, window_params = [{pipeline_mode = #tpu.pipeline_mode<synchronous>, transform_indices = @transform_0, window_bounds = array<i64: 8, 16>}, {pipeline_mode = #tpu.pipeline_mode<synchronous>, transform_indices = @transform_1, window_bounds = array<i64: 8, 32>}, {pipeline_mode = #tpu.pipeline_mode<synchronous>, transform_indices = @transform_2, window_bounds = array<i64: 8, 8, 32>}, {pipeline_mode = #tpu.pipeline_mode<synchronous>, transform_indices = @transform_3, window_bounds = array<i64: 32, 32>}, {pipeline_mode = #tpu.pipeline_mode<synchronous>, transform_indices = @transform_4, window_bounds = array<i64: 32, 32>}, {pipeline_mode = #tpu.pipeline_mode<synchronous>, transform_indices = @transform_5, window_bounds = array<i64: 1, 32>}, {pipeline_mode = #tpu.pipeline_mode<synchronous>, transform_indices = @transform_6, window_bounds = array<i64: 1, 32>}, {pipeline_mode = #tpu.pipeline_mode<synchronous>, transform_indices = @transform_7, window_bounds = array<i64: 16, 96>}, {pipeline_mode = #tpu.pipeline_mode<synchronous>, transform_indices = @transform_8, window_bounds = array<i64: 32, 96>}, {pipeline_mode = #tpu.pipeline_mode<synchronous>, transform_indices = @transform_9, window_bounds = array<i64: 32, 96>}, {pipeline_mode = #tpu.pipeline_mode<synchronous>, transform_indices = @transform_10, window_bounds = array<i64: 1, 96>}, {pipeline_mode = #tpu.pipeline_mode<synchronous>, transform_indices = @transform_11, window_bounds = array<i64: 1, 96>}, {transform_indices = @transform_12, window_bounds = array<i64: 80, 128>}, {transform_indices = @transform_13, window_bounds = array<i64: 1, 128>}, {transform_indices = @transform_14, window_bounds = array<i64: 8, 128>}, {pipeline_mode = #tpu.pipeline_mode<synchronous>, transform_indices = @transform_15, window_bounds = array<i64: 8, 32>}]} {
    %c0_i32 = arith.constant 0 : i32
    %0 = arith.cmpi eq, %arg0, %c0_i32 : i32
    %1 = arith.extui %0 : i1 to i32
    %c0_i32_0 = arith.constant 0 : i32
    %2 = arith.cmpi ne, %1, %c0_i32_0 : i32
    scf.if %2 {
      %c0_8 = arith.constant 0 : index
      %c0_9 = arith.constant 0 : index
      %10 = vector.load %arg1[%c0_8, %c0_9] : memref<8x16xf32, #tpu.memory_space<vmem>>, vector<8x16xf32>
      %c0_10 = arith.constant 0 : index
      %c0_11 = arith.constant 0 : index
      %11 = vector.load %arg2[%c0_10, %c0_11] : memref<8x32xf32, #tpu.memory_space<vmem>>, vector<8x32xf32>
      %c0_12 = arith.constant 0 : index
      %c0_13 = arith.constant 0 : index
      %c0_14 = arith.constant 0 : index
      %12 = vector.load %arg3[%c0_12, %c0_13, %c0_14] : memref<8x8x32xf32, #tpu.memory_space<vmem>>, vector<8x8x32xf32>
      %13 = arith.truncf %10 : vector<8x16xf32> to vector<8x16xbf16>
      %14 = arith.truncf %11 : vector<8x32xf32> to vector<8x32xbf16>
      %15 = arith.truncf %12 : vector<8x8x32xf32> to vector<8x8x32xbf16>
      %c0_15 = arith.constant 0 : index
      %c0_16 = arith.constant 0 : index
      %16 = vector.load %arg4[%c0_15, %c0_16] : memref<32x32xbf16, #tpu.memory_space<vmem>>, vector<32x32xbf16>
      %cst_17 = arith.constant dense<0.000000e+00> : vector<8x32xf32>
      %17 = tpu.matmul %14, %16, %cst_17 {dimension_numbers = #tpu.dot_dimension_numbers<[1], [0], [0], [1], [0, 0, 1, 1], [], []>} : vector<8x32xbf16>, vector<32x32xbf16>, vector<8x32xf32> -> vector<8x32xf32>
      %c0_18 = arith.constant 0 : index
      %c0_19 = arith.constant 0 : index
      %18 = vector.load %arg6[%c0_18, %c0_19] : memref<1x32xf32, #tpu.memory_space<vmem>>, vector<1x32xf32>
      %19 = vector.broadcast %18 : vector<1x32xf32> to vector<8x32xf32>
      %20 = arith.addf %17, %19 : vector<8x32xf32>
      %21 = vector.shape_cast %15 : vector<8x8x32xbf16> to vector<64x32xbf16>
      %c0_20 = arith.constant 0 : index
      %c0_21 = arith.constant 0 : index
      %22 = vector.load %arg5[%c0_20, %c0_21] : memref<32x32xbf16, #tpu.memory_space<vmem>>, vector<32x32xbf16>
      %cst_22 = arith.constant dense<0.000000e+00> : vector<64x32xf32>
      %23 = tpu.matmul %21, %22, %cst_22 {dimension_numbers = #tpu.dot_dimension_numbers<[1], [0], [0], [1], [0, 0, 1, 1], [], []>} : vector<64x32xbf16>, vector<32x32xbf16>, vector<64x32xf32> -> vector<64x32xf32>
      %24 = vector.shape_cast %23 : vector<64x32xf32> to vector<8x8x32xf32>
      %25 = vector.shape_cast %20 : vector<8x32xf32> to vector<8x1x32xf32>
      %26 = vector.broadcast %25 : vector<8x1x32xf32> to vector<8x8x32xf32>
      %27 = arith.addf %26, %24 : vector<8x8x32xf32>
      %28 = math.tanh %27 : vector<8x8x32xf32>
      %c0_23 = arith.constant 0 : index
      %c0_24 = arith.constant 0 : index
      %29 = vector.load %arg7[%c0_23, %c0_24] : memref<1x32xf32, #tpu.memory_space<vmem>>, vector<1x32xf32>
      %30 = vector.shape_cast %29 : vector<1x32xf32> to vector<1x1x32xf32>
      %31 = vector.broadcast %30 : vector<1x1x32xf32> to vector<8x8x32xf32>
      %32 = arith.mulf %28, %31 : vector<8x8x32xf32>
      %cst_25 = arith.constant dense<0.000000e+00> : vector<8x8xf32>
      %33 = vector.multi_reduction <add>, %32, %cst_25 [2] : vector<8x8x32xf32> to vector<8x8xf32>
      %cst_26 = arith.constant dense<0xFF800000> : vector<8xf32>
      %34 = vector.multi_reduction <maximumf>, %33, %cst_26 [1] : vector<8x8xf32> to vector<8xf32>
      %35 = vector.shape_cast %34 : vector<8xf32> to vector<8x1xf32>
      %36 = vector.broadcast %35 : vector<8x1xf32> to vector<8x8xf32>
      %37 = arith.subf %33, %36 : vector<8x8xf32>
      %38 = math.exp %37 : vector<8x8xf32>
      %cst_27 = arith.constant dense<0.000000e+00> : vector<8xf32>
      %39 = vector.multi_reduction <add>, %38, %cst_27 [1] : vector<8x8xf32> to vector<8xf32>
      %40 = vector.shape_cast %39 : vector<8xf32> to vector<8x1xf32>
      %41 = tpu.reciprocal %40 {approx = true} : vector<8x1xf32> -> vector<8x1xf32>
      %42 = vector.broadcast %41 : vector<8x1xf32> to vector<8x8xf32>
      %43 = arith.mulf %38, %42 : vector<8x8xf32>
      %44 = vector.shape_cast %43 : vector<8x8xf32> to vector<8x8x1xf32>
      %45 = vector.broadcast %44 : vector<8x8x1xf32> to vector<8x8x32xf32>
      %46 = arith.mulf %45, %12 : vector<8x8x32xf32>
      %cst_28 = arith.constant dense<0.000000e+00> : vector<8x32xf32>
      %47 = vector.multi_reduction <add>, %46, %cst_28 [1] : vector<8x8x32xf32> to vector<8x32xf32>
      %48 = arith.truncf %47 : vector<8x32xf32> to vector<8x32xbf16>
      %c0_29 = arith.constant 0 : index
      %c0_30 = arith.constant 0 : index
      %49 = vector.load %arg8[%c0_29, %c0_30] : memref<16x96xbf16, #tpu.memory_space<vmem>>, vector<16x96xbf16>
      %cst_31 = arith.constant dense<0.000000e+00> : vector<8x96xf32>
      %50 = tpu.matmul %13, %49, %cst_31 {dimension_numbers = #tpu.dot_dimension_numbers<[1], [0], [0], [1], [0, 0, 1, 1], [], []>} : vector<8x16xbf16>, vector<16x96xbf16>, vector<8x96xf32> -> vector<8x96xf32>
      %c0_32 = arith.constant 0 : index
      %c0_33 = arith.constant 0 : index
      %51 = vector.load %arg9[%c0_32, %c0_33] : memref<32x96xbf16, #tpu.memory_space<vmem>>, vector<32x96xbf16>
      %cst_34 = arith.constant dense<0.000000e+00> : vector<8x96xf32>
      %52 = tpu.matmul %48, %51, %cst_34 {dimension_numbers = #tpu.dot_dimension_numbers<[1], [0], [0], [1], [0, 0, 1, 1], [], []>} : vector<8x32xbf16>, vector<32x96xbf16>, vector<8x96xf32> -> vector<8x96xf32>
      %53 = arith.addf %50, %52 : vector<8x96xf32>
      %c0_35 = arith.constant 0 : index
      %c0_36 = arith.constant 0 : index
      %54 = vector.load %arg11[%c0_35, %c0_36] : memref<1x96xf32, #tpu.memory_space<vmem>>, vector<1x96xf32>
      %55 = vector.broadcast %54 : vector<1x96xf32> to vector<8x96xf32>
      %56 = arith.addf %53, %55 : vector<8x96xf32>
      %c0_37 = arith.constant 0 : index
      %c0_38 = arith.constant 0 : index
      %57 = vector.load %arg10[%c0_37, %c0_38] : memref<32x96xbf16, #tpu.memory_space<vmem>>, vector<32x96xbf16>
      %cst_39 = arith.constant dense<0.000000e+00> : vector<8x96xf32>
      %58 = tpu.matmul %14, %57, %cst_39 {dimension_numbers = #tpu.dot_dimension_numbers<[1], [0], [0], [1], [0, 0, 1, 1], [], []>} : vector<8x32xbf16>, vector<32x96xbf16>, vector<8x96xf32> -> vector<8x96xf32>
      %c0_40 = arith.constant 0 : index
      %c0_41 = arith.constant 0 : index
      %59 = vector.load %arg12[%c0_40, %c0_41] : memref<1x96xf32, #tpu.memory_space<vmem>>, vector<1x96xf32>
      %60 = vector.broadcast %59 : vector<1x96xf32> to vector<8x96xf32>
      %61 = arith.addf %58, %60 : vector<8x96xf32>
      %62 = vector.extract_strided_slice %56 {offsets = [0, 0], sizes = [8, 32], strides = [1, 1]} : vector<8x96xf32> to vector<8x32xf32>
      %63 = vector.extract_strided_slice %61 {offsets = [0, 0], sizes = [8, 32], strides = [1, 1]} : vector<8x96xf32> to vector<8x32xf32>
      %64 = arith.addf %62, %63 : vector<8x32xf32>
      %65 = arith.negf %64 : vector<8x32xf32>
      %66 = math.exp %65 : vector<8x32xf32>
      %cst_42 = arith.constant 1.000000e+00 : f32
      %67 = vector.broadcast %cst_42 : f32 to vector<8x32xf32>
      %68 = arith.addf %67, %66 : vector<8x32xf32>
      %69 = arith.divf %67, %68 : vector<8x32xf32>
      %70 = vector.extract_strided_slice %56 {offsets = [0, 32], sizes = [8, 32], strides = [1, 1]} : vector<8x96xf32> to vector<8x32xf32>
      %71 = vector.extract_strided_slice %61 {offsets = [0, 32], sizes = [8, 32], strides = [1, 1]} : vector<8x96xf32> to vector<8x32xf32>
      %72 = arith.addf %70, %71 : vector<8x32xf32>
      %73 = arith.negf %72 : vector<8x32xf32>
      %74 = math.exp %73 : vector<8x32xf32>
      %cst_43 = arith.constant 1.000000e+00 : f32
      %75 = vector.broadcast %cst_43 : f32 to vector<8x32xf32>
      %76 = arith.addf %75, %74 : vector<8x32xf32>
      %77 = arith.divf %75, %76 : vector<8x32xf32>
      %78 = vector.extract_strided_slice %56 {offsets = [0, 64], sizes = [8, 32], strides = [1, 1]} : vector<8x96xf32> to vector<8x32xf32>
      %79 = vector.extract_strided_slice %61 {offsets = [0, 64], sizes = [8, 32], strides = [1, 1]} : vector<8x96xf32> to vector<8x32xf32>
      %80 = arith.mulf %69, %79 : vector<8x32xf32>
      %81 = arith.addf %78, %80 : vector<8x32xf32>
      %82 = math.tanh %81 : vector<8x32xf32>
      %cst_44 = arith.constant 1.000000e+00 : f32
      %83 = vector.broadcast %cst_44 : f32 to vector<8x32xf32>
      %84 = arith.subf %83, %77 : vector<8x32xf32>
      %85 = arith.mulf %84, %82 : vector<8x32xf32>
      %86 = arith.mulf %77, %11 : vector<8x32xf32>
      %87 = arith.addf %85, %86 : vector<8x32xf32>
      %c0_45 = arith.constant 0 : index
      %c0_46 = arith.constant 0 : index
      %88 = vector.load %arg16[%c0_45, %c0_46] : memref<8x32xf32, #tpu.memory_space<vmem>>, vector<8x32xf32>
      tpu.vector_store %arg16[%c0_45, %c0_46], %87 {strides = array<i32>} : memref<8x32xf32, #tpu.memory_space<vmem>>, vector<8x32xf32>,
      %89 = tpu.concatenate %87, %47, %10 in 1 : vector<8x32xf32>, vector<8x32xf32>, vector<8x16xf32> -> vector<8x80xf32>
      %90 = arith.truncf %89 : vector<8x80xf32> to vector<8x80xbf16>
      %c0_47 = arith.constant 0 : index
      %c0_48 = arith.constant 0 : index
      %91 = vector.load %arg17[%c0_47, %c0_48] : memref<8x80xbf16, #tpu.memory_space<vmem>>, vector<8x80xbf16>
      tpu.vector_store %arg17[%c0_47, %c0_48], %90 {strides = array<i32>} : memref<8x80xbf16, #tpu.memory_space<vmem>>, vector<8x80xbf16>,
    } else {
    }
    %c0 = arith.constant 0 : index
    %c0_1 = arith.constant 0 : index
    %3 = vector.load %arg17[%c0, %c0_1] : memref<8x80xbf16, #tpu.memory_space<vmem>>, vector<8x80xbf16>
    %c0_2 = arith.constant 0 : index
    %c0_3 = arith.constant 0 : index
    %4 = vector.load %arg13[%c0_2, %c0_3] : memref<80x128xbf16, #tpu.memory_space<vmem>>, vector<80x128xbf16>
    %cst = arith.constant dense<0.000000e+00> : vector<8x128xf32>
    %5 = tpu.matmul %3, %4, %cst {dimension_numbers = #tpu.dot_dimension_numbers<[1], [0], [0], [1], [0, 0, 1, 1], [], []>} : vector<8x80xbf16>, vector<80x128xbf16>, vector<8x128xf32> -> vector<8x128xf32>
    %c0_4 = arith.constant 0 : index
    %c0_5 = arith.constant 0 : index
    %6 = vector.load %arg14[%c0_4, %c0_5] : memref<1x128xf32, #tpu.memory_space<vmem>>, vector<1x128xf32>
    %7 = vector.broadcast %6 : vector<1x128xf32> to vector<8x128xf32>
    %8 = arith.addf %5, %7 : vector<8x128xf32>
    %c0_6 = arith.constant 0 : index
    %c0_7 = arith.constant 0 : index
    %9 = vector.load %arg15[%c0_6, %c0_7] : memref<8x128xf32, #tpu.memory_space<vmem>>, vector<8x128xf32>
    tpu.vector_store %arg15[%c0_6, %c0_7], %8 {strides = array<i32>} : memref<8x128xf32, #tpu.memory_space<vmem>>, vector<8x128xf32>,
    return
  }
  func.func @transform_0(%arg0: i32) -> (i32, i32) {
    %c0_i32 = arith.constant 0 : i32
    %c0_i32_0 = arith.constant 0 : i32
    %c0_i32_1 = arith.constant 0 : i32
    return %c0_i32, %c0_i32_0 : i32, i32
  }
  func.func @transform_1(%arg0: i32) -> (i32, i32) {
    %c0_i32 = arith.constant 0 : i32
    %c0_i32_0 = arith.constant 0 : i32
    %c0_i32_1 = arith.constant 0 : i32
    return %c0_i32, %c0_i32_0 : i32, i32
  }
  func.func @transform_2(%arg0: i32) -> (i32, i32, i32) {
    %c0_i32 = arith.constant 0 : i32
    %c0_i32_0 = arith.constant 0 : i32
    %c0_i32_1 = arith.constant 0 : i32
    %c0_i32_2 = arith.constant 0 : i32
    return %c0_i32, %c0_i32_0, %c0_i32_1 : i32, i32, i32
  }
  func.func @transform_3(%arg0: i32) -> (i32, i32) {
    %c0_i32 = arith.constant 0 : i32
    %c0_i32_0 = arith.constant 0 : i32
    %c0_i32_1 = arith.constant 0 : i32
    return %c0_i32, %c0_i32_0 : i32, i32
  }
  func.func @transform_4(%arg0: i32) -> (i32, i32) {
    %c0_i32 = arith.constant 0 : i32
    %c0_i32_0 = arith.constant 0 : i32
    %c0_i32_1 = arith.constant 0 : i32
    return %c0_i32, %c0_i32_0 : i32, i32
  }
  func.func @transform_5(%arg0: i32) -> (i32, i32) {
    %c0_i32 = arith.constant 0 : i32
    %c0_i32_0 = arith.constant 0 : i32
    %c0_i32_1 = arith.constant 0 : i32
    return %c0_i32, %c0_i32_0 : i32, i32
  }
  func.func @transform_6(%arg0: i32) -> (i32, i32) {
    %c0_i32 = arith.constant 0 : i32
    %c0_i32_0 = arith.constant 0 : i32
    %c0_i32_1 = arith.constant 0 : i32
    return %c0_i32, %c0_i32_0 : i32, i32
  }
  func.func @transform_7(%arg0: i32) -> (i32, i32) {
    %c0_i32 = arith.constant 0 : i32
    %c0_i32_0 = arith.constant 0 : i32
    %c0_i32_1 = arith.constant 0 : i32
    return %c0_i32, %c0_i32_0 : i32, i32
  }
  func.func @transform_8(%arg0: i32) -> (i32, i32) {
    %c0_i32 = arith.constant 0 : i32
    %c0_i32_0 = arith.constant 0 : i32
    %c0_i32_1 = arith.constant 0 : i32
    return %c0_i32, %c0_i32_0 : i32, i32
  }
  func.func @transform_9(%arg0: i32) -> (i32, i32) {
    %c0_i32 = arith.constant 0 : i32
    %c0_i32_0 = arith.constant 0 : i32
    %c0_i32_1 = arith.constant 0 : i32
    return %c0_i32, %c0_i32_0 : i32, i32
  }
  func.func @transform_10(%arg0: i32) -> (i32, i32) {
    %c0_i32 = arith.constant 0 : i32
    %c0_i32_0 = arith.constant 0 : i32
    %c0_i32_1 = arith.constant 0 : i32
    return %c0_i32, %c0_i32_0 : i32, i32
  }
  func.func @transform_11(%arg0: i32) -> (i32, i32) {
    %c0_i32 = arith.constant 0 : i32
    %c0_i32_0 = arith.constant 0 : i32
    %c0_i32_1 = arith.constant 0 : i32
    return %c0_i32, %c0_i32_0 : i32, i32
  }
  func.func @transform_12(%arg0: i32) -> (i32, i32) {
    %c0_i32 = arith.constant 0 : i32
    %c0_i32_0 = arith.constant 0 : i32
    return %c0_i32, %arg0 : i32, i32
  }
  func.func @transform_13(%arg0: i32) -> (i32, i32) {
    %c0_i32 = arith.constant 0 : i32
    %c0_i32_0 = arith.constant 0 : i32
    return %c0_i32, %arg0 : i32, i32
  }
  func.func @transform_14(%arg0: i32) -> (i32, i32) {
    %c0_i32 = arith.constant 0 : i32
    %c0_i32_0 = arith.constant 0 : i32
    return %c0_i32, %arg0 : i32, i32
  }
  func.func @transform_15(%arg0: i32) -> (i32, i32) {
    %c0_i32 = arith.constant 0 : i32
    %c0_i32_0 = arith.constant 0 : i32
    %c0_i32_1 = arith.constant 0 : i32
    return %c0_i32, %c0_i32_0 : i32, i32
  }
}

</mosaic_0001>

<bundles_post_ra>
// kernel: tpu_custom_call.1
= control target key start
LH: loop header
LB: loop body
LE: loop exit
PB: predicated region body
PF: predicated region fallthrough
CT: control target
= control target key end

     0   :  { %s2798_s0 = inlined_call_operand.hbm [shape: f32[8,16], index: 0, kind: input, shape index: {}]   ;;  %s2799_s1 = inlined_call_operand.hbm [shape: f32[8,32], index: 1, kind: input, shape index: {}]   ;;  %s2800_s2 = inlined_call_operand.hbm [shape: f32[8,8,32], index: 2, kind: input, shape index: {}]   ;;  %s2801_s3 = inlined_call_operand.hbm [shape: bf16[32,32], index: 3, kind: input, shape index: {}]   ;;  %s2802_s4 = inlined_call_operand.hbm [shape: bf16[32,32], index: 4, kind: input, shape index: {}]   ;;  %s2803_s5 = inlined_call_operand.vmem [shape: f32[1,32], index: 5, kind: input, shape index: {}]   ;;  %s2804_s6 = inlined_call_operand.vmem [shape: f32[1,32], index: 6, kind: input, shape index: {}]   ;;  %s2805_s7 = inlined_call_operand.hbm [shape: bf16[16,96], index: 7, kind: input, shape index: {}]   ;;  %s2806_s8 = inlined_call_operand.hbm [shape: bf16[32,96], index: 8, kind: input, shape index: {}]   ;;  %s2807_s9 = inlined_call_operand.hbm [shape: bf16[32,96], index: 9, kind: input, shape index: {}]   ;;  %s2808_s10 = inlined_call_operand.vmem [shape: f32[1,96], index: 10, kind: input, shape index: {}]   ;;  %s2809_s11 = inlined_call_operand.vmem [shape: f32[1,96], index: 11, kind: input, shape index: {}]   ;;  %s2810_s12 = inlined_call_operand.hbm [shape: bf16[80,256], index: 12, kind: input, shape index: {}]   ;;  %s2811_s13 = inlined_call_operand.vmem [shape: f32[1,256], index: 13, kind: input, shape index: {}]   ;;  %s2812_s14 = inlined_call_operand.hbm [shape: f32[8,256], index: 14, kind: output, shape index: {0}]   ;;  %s2813_s15 = inlined_call_operand.hbm [shape: f32[8,32], index: 15, kind: output, shape index: {1}]  }
   0x1   :  { %2819 = sst [smem:[#allocation29_spill]] %s2798_s0 }
   0x2   :  { %2820 = sst [smem:[#allocation30_spill]] %s2799_s1 }
   0x3   :  { %2821 = sst [smem:[#allocation31_spill]] %s2800_s2 }
   0x4   :  { %2822 = sst [smem:[#allocation32_spill]] %s2801_s3 }
   0x5   :  { %2823 = sst [smem:[#allocation33_spill]] %s2802_s4 }
   0x6   :  { %2824 = sst [smem:[#allocation34_spill]] %s2803_s5 }
   0x7   :  { %2825 = sst [smem:[#allocation35_spill]] %s2805_s7 }
   0x8   :  { %2826 = sst [smem:[#allocation36_spill]] %s2806_s8 }
   0x9   :  { %2827 = sst [smem:[#allocation37_spill]] %s2808_s10 }
   0xa   :  { %2828 = sst [smem:[#allocation38_spill]] %s2809_s11 }
   0xb   :  { %2829 = sst [smem:[#allocation39_spill]] %s2812_s14 }
   0xc   :  { %2830 = sst [smem:[#allocation40_spill]] %s2813_s15 }
   0xd   :  { %21 = vsyncpa [#allocation4], 0 }
   0xe   :  { %22 = vsyncpa [#allocation7], 0 }
   0xf   :  { %23 = vsyncpa [#allocation10], 0 }
  0x10   :  { %24 = vsyncpa [#allocation13], 0 }
  0x11   :  { %25 = vsyncpa [#allocation16], 0 }
  0x12   :  { %26 = vsyncpa [#allocation5], 0 }
  0x13   :  { %28 = vsyncpa [#allocation5 + $0x1], 0 }
  0x14   :  { %29 = vsyncpa [#allocation20], 0  ;;  %s2378_s18 = smov 0   ;;  %s2380_s19 = smov 0  }
  0x15   :  { %s2382_s20 = smov 0   ;;  %s2384_s21 = smov 0  }
  0x16 LB: > { %s2831_s0 = sld [smem:[#allocation29_spill]]  ;;  %s2402_s25 = sadd.s32 4294967295, %s2279_s21   ;;  %s2279_s21 = sphi %s2384_s21, %s2860_s21   ;;  %s2275_s20 = sphi %s2382_s20, %s2859_s20   ;;  %s2271_s19 = sphi %s2380_s19, %s2858_s19   ;;  %s2267_s18 = sphi %s2378_s18, %s2857_s18  }
  0x17   : > { %p1589_p0 = scmp.ge.s32.totalorder %s2279_s21, 1  ;;  %p308_p1 = scmp.eq.s32.totalorder %s2402_s25, 0 }
  0x18   : > { %p391_p2 = scmp.lt.s32.totalorder %s2279_s21, 3  ;;  %s2281_s27 = smov [#allocation3]  }
  0x19   : > { %s405_s28 = sshll.u32 %s2281_s27, 4  ;;  %s2833_s1 = sld [smem:[#allocation30_spill]]  ;;  %s406_s28 = int_to_ptr.vmem [resolvable:$true] %s405_s28 }
  0x1a   : > { %p2408_p4 = pnand %p1589_p0, %p391_p2  ;;  %s2282_s22 = smov [#allocation6]  }
  0x1b   : > { %s417_s23 = sshll.u32 %s2282_s22, 4  ;;  %s2835_s3 = sld [smem:[#allocation32_spill]]  ;;  %s418_s23 = int_to_ptr.vmem [resolvable:$true] %s417_s23 }
  0x1c   : > { %s403_s24 = sshll.u32 %s2831_s0, 4  ;;  %p1741_p6 = pneg %p2408_p4  ;;  %s404_s24 = int_to_ptr.hbm [resolvable:$true] %s403_s24 }
  0x1d   : > { %s2283_s29 = smov [#allocation9]   ;;  %s2836_s7 = sld [smem:[#allocation35_spill]] }
  0x1e   : > { %p2420_p7 = pnand %p1741_p6, %p308_p1  ;;  %s442_s30 = sshll.u32 %s2283_s29, 4  ;;  %s443_s30 = int_to_ptr.vmem [resolvable:$true] %s442_s30 }
  0x1f   : > { %s415_s16 = sshll.u32 %s2833_s1, 4  ;;  %s2816_s11 = smov 64   ;;  %s416_s16 = int_to_ptr.hbm [resolvable:$true] %s415_s16 }
  0x20   : > { %1744 = dma.hbm_to_vmem [thread:$0]  (!%p2420_p7), %s404_s24, 128, %s406_s28, [#allocation4]  }
  0x21   : > { %s440_s14 = sshll.u32 %s2835_s3, 4  ;;  %s2817_s22 = smov 4   ;;  %s441_s14 = int_to_ptr.hbm [resolvable:$true] %s440_s14 }
  0x22   : > { %1747 = dma.hbm_to_vmem [thread:$0]  (!%p2420_p7), %s416_s16, 128, %s418_s23, [#allocation7]  }
  0x23   : > { %s474_s10 = sshll.u32 %s2836_s7, 4  ;;  %s2286_s0 = smov [#allocation12]   ;;  %s475_s10 = int_to_ptr.hbm [resolvable:$true] %s474_s10 }
  0x24   : > { %1753 = dma.hbm_to_vmem [thread:$0]  (!%p2420_p7), %s441_s14, 256, %s443_s30, [#allocation10], %s2816_s11, %s2816_s11, %s2817_s22  }
  0x25   : > { %s476_s24 = sshll.u32 %s2286_s0, 4  ;;  %s2837_s2 = sld [smem:[#allocation31_spill]]  ;;  %s477_s24 = int_to_ptr.vmem [resolvable:$true] %s476_s24 }
  0x26   : > { %1759 = dma.hbm_to_vmem [thread:$0]  (!%p2420_p7), %s475_s10, 128, %s477_s24, [#allocation13], %s2816_s11, %s2816_s11, %s2817_s22  }
  0x27   : > { %s2287_s1 = smov [#allocation8]   ;;  %s2838_s4 = sld [smem:[#allocation33_spill]] }
  0x28   : > { %s428_s15 = sshll.u32 %s2287_s1, 4  ;;  %s2815_s30 = smov 128   ;;  %s429_s15 = int_to_ptr.vmem [resolvable:$true] %s428_s15 }
  0x29   : > { %s2289_s0 = smov 8   ;;  %s2290_s28 = smov [#allocation11]  }
  0x2a   : > { %s456_s16 = sshll.u32 %s2290_s28, 4  ;;  %s2839_s8 = sld [smem:[#allocation36_spill]]  ;;  %s457_s16 = int_to_ptr.vmem [resolvable:$true] %s456_s16 }
  0x2b   : > { %s426_s23 = sshll.u32 %s2837_s2, 4  ;;  %s502_s27 = sshll.u32 %s2807_s9, 4  ;;  %s427_s23 = int_to_ptr.hbm [resolvable:$true] %s426_s23  ;;  %s503_s27 = int_to_ptr.hbm [resolvable:$true] %s502_s27 }
  0x2c   : > { %1750 = dma.hbm_to_vmem [thread:$0]  (!%p2420_p7), %s427_s23, 1024, %s429_s15, [#allocation7], %s2815_s30, %s2815_s30, %s2289_s0  }
  0x2d   : > { %s454_s29 = sshll.u32 %s2838_s4, 4  ;;  %s2291_s14 = smov [#allocation14]   ;;  %s455_s29 = int_to_ptr.hbm [resolvable:$true] %s454_s29 }
  0x2e   : > { %1756 = dma.hbm_to_vmem [thread:$0]  (!%p2420_p7), %s455_s29, 256, %s457_s16, [#allocation10], %s2816_s11, %s2816_s11, %s2817_s22  }
  0x2f   : > { %s490_s0 = sshll.u32 %s2291_s14, 4  ;;  %s2292_s29 = smov [#allocation15]   ;;  %s491_s0 = int_to_ptr.vmem [resolvable:$true] %s490_s0 }
  0x30   : > { %s488_s1 = sshll.u32 %s2839_s8, 4  ;;  %s504_s28 = sshll.u32 %s2292_s29, 4  ;;  %s489_s1 = int_to_ptr.hbm [resolvable:$true] %s488_s1  ;;  %s505_s28 = int_to_ptr.vmem [resolvable:$true] %s504_s28 }
  0x31   : > { %1762 = dma.hbm_to_vmem [thread:$0]  (!%p2420_p7), %s489_s1, 256, %s491_s0, [#allocation13], %s2816_s11, %s2816_s11, %s2817_s22  }
  0x32   : > { %1765 = dma.hbm_to_vmem [thread:$0]  (!%p2420_p7), %s503_s27, 256, %s505_s28, [#allocation16], %s2816_s11, %s2816_s11, %s2817_s22  }
  0x33   : > { %s1588_s16 = sadd.s32 4294967294, %s2279_s21   ;;  %s2477_s10 = sadd.s32 1, %s2279_s21  }
  0x34   : > { %s291_s24 = ssub.s32 %s2279_s21, %s2477_s10  ;;  %s294_s23 = sadd.s32 1, %s2275_s20 }
  0x35   : > { %p292_p8 = scmp.eq.s32.totalorder %s291_s24, 0  ;;  %p301_p9 = scmp.ne.s32.totalorder %s2275_s20, %s2271_s19 }
  0x36   : > { %p302_p10 = scmp.eq.s32.totalorder %s2279_s21, 0  ;;  %p307_p11 = scmp.ne.s32.totalorder %s2271_s19, %s2267_s18 }
  0x37   : > { %s2488_s1 = scalar_select %p292_p8, %s2275_s20, %s294_s23  }
  0x38   : > { %p303_p12 = por %p302_p10, %p301_p9  ;;  %p2492_p13 = por %p308_p1, %p307_p11 }
  0x39   : > { %p2818_p0 = scmp.eq.s32.totalorder %s2402_s25, 1  ;;  %p363_p2 = scmp.eq.s32.totalorder %s1588_s16, 1 }
  0x3a   : > { %p1782_p6 = scmp.lt.s32.totalorder %s2279_s21, 2  ;;  %s524_s15 = sand.u32 1, %s2279_s21  }
  0x3b   : > { %p2501_p7 = por %p2818_p0, %p301_p9  ;;  %p2505_p5 = por %p363_p2, %p307_p11 }
  0x3c   : > { %s526_s0 = sand.u32 1, %s2275_s20   ;;  %s1599_s28 = sshll.u32 %s2279_s21, 2 }
  0x3d   : > { %s1699_s29 = smul.u32 40, %s526_s0  ;;  %s532_s30 = scalar_lea.hbm %s2810_s12, %s1599_s28 }
  0x3e   : > { %p2514_p8 = pnand %p1782_p6, %p303_p12  ;;  %s533_s11 = sshll.u32 %s532_s30, 4  ;;  %s534_s11 = int_to_ptr.hbm [resolvable:$true] %s533_s11 }
  0x3f   : > { %s528_s22 = scalar_lea.vmem [#allocation17], %s1699_s29  ;;  %s525_s3 = scalar_lea.sflag [#allocation4], %s524_s15 }
  0x40   : > { %s535_s2 = sshll.u32 %s528_s22, 4  ;;  %s2131_s4 = sshra.s32 %s534_s11, 4  ;;  %s536_s2 = int_to_ptr.vmem [resolvable:$true] %s535_s2  ;;  %s2132_s4 = int_to_ptr.hbm [resolvable:$true] %s2131_s4 }
  0x41   : > { %s2133_s7 = scalar_lea.hbm %s2132_s4, 40  ;;  %p2135_p10 = pneg %p2514_p8 }
  0x42   : > { %p2134_p9 = scmp.ne.s32.totalorder %s2132_s4, %s2133_s7  ;;  %s2138_s24 = scalar_lea.hbm %s2810_s12, 80 }
  0x43   : > { %p2139_p12 = scmp.lt.s32.totalorder %s2132_s4, %s2810_s12  ;;  %p2140_p6 = scmp.lt.s32.totalorder %s2138_s24, %s2133_s7 }
  0x44   : > { %p2136_p11 = pnand %p2135_p10, %p2134_p9 }
  0x45   : > { %p2141_p0 = por %p2140_p6, %p2139_p12 }
  0x46   : > { %p2137_p2 = pneg %p2136_p11 }
  0x48   : > { %p2142_p3 = pnand %p2141_p0, %p2137_p2 }
  0x4a   : > { %2145 = shalt.err (!%p2142_p3)
}
  0x4b   : > { %s2844_s22 = smov 4   ;;  %s2845_s30 = smov 64  }
  0x4c   : > { %s2846_s15 = smov 128   ;;  %553 = sbr.rel (%p2408_p4) target bundleno = 1652 (0x674), region = 76 }
  0x4d   : > { %1769 = dma.hbm_to_vmem [thread:$0]  (!%p2514_p8), %s534_s11, 640, %s536_s2, %s525_s3, %s2846_s15, %s2845_s30, %s2844_s22  }
  0x51   : > { %2234 = dma.done.wait (%p308_p1), [#allocation4], 128  }
  0x52   : > { %2236 = vsyncadd (%p308_p1), [#allocation4], 4294967168 }
  0x53   : > { %2238 = dma.done.wait (%p308_p1), [#allocation7], 1152  }
  0x54   : > { %2240 = vsyncadd (%p308_p1), [#allocation7], 4294966144 }
  0x55   : > { %2242 = dma.done.wait (%p308_p1), [#allocation10], 512  }
  0x56   : > { %2244 = vsyncadd (%p308_p1), [#allocation10], 4294966784 }
  0x57   : > { %2246 = dma.done.wait (%p308_p1), [#allocation13], 384  }
  0x58   : > { %2248 = vsyncadd (%p308_p1), [#allocation13], 4294966912 }
  0x59   : > { %2250 = dma.done.wait (%p308_p1), [#allocation16], 256  }
  0x5a   : > { %2252 = vsyncadd (%p308_p1), [#allocation16], 4294967040  ;;  %s595_s2 = sand.u32 1, %s2402_s25   ;;  %s2555_s3 = sand.u32 1, %s2271_s19  }
  0x5b   : > { %s1700_s4 = smul.u32 40, %s2555_s3  ;;  %s596_s7 = scalar_lea.sflag [#allocation4], %s595_s2 }
  0x5d   : > { %s2558_s8 = scalar_lea.vmem [#allocation17], %s1700_s4 }
  0x5e   : > { %2254 = dma.done.wait (%p2492_p13), %s596_s7, 640  }
  0x5f   : > { %2256 = vsyncadd (%p2492_p13), %s596_s7, 4294966656  ;;  %s1609_s11 = sshll.u32 %s2555_s3, 3  ;;  %p650_p1 = scmp.lt.s32.totalorder %s2402_s25, 1 }
  0x60   : > { %s2573_s28 = scalar_lea.vmem [#allocation18], %s1609_s11  ;;  %p2847_p3 = scmp.ne.s32.totalorder %s2402_s25, 0 }
  0x61   : > { %s2567_s26 = scalar_select %p650_p1, %s2402_s25, 1 }
  0x62   : > { %657 = sbr.rel (%p2847_p3) target bundleno = 1495 (0x5d7), region = 116  ;;  %s2848_s5 = sld [smem:[#allocation34_spill]] (!%p2847_p3) }
  0x63   : > { %s652_s0 = scalar_lea.vmem %s2811_s13, %s2567_s26  ;;  %s2294_s30 = smov (!%p2847_p3), 32  }
  0x64   : > { %s2849_s4 = sld [smem:[#allocation38_spill]] (!%p2847_p3)  ;;  %s2295_s7 = smov (!%p2847_p3), 64  }
  0x65   : > { %s2850_s16 = sld [smem:[#allocation37_spill]] (!%p2847_p3)  ;;  %s2296_s17 = smov (!%p2847_p3), 96  }
  0x67   : > { %v1684_v0 = vld [vmem:[#allocation9 + $0x8] sm:$0xff]  ;;  %v1686_v1 = vld [vmem:[#allocation11 + $0x8] sm:$0xff]  ;;  %v1683_v2 = vld [vmem:[#allocation9] sm:$0xff]  ;;  %vm698_vm0 = vcmask 261120   ;;  %vm886_vm1 = vcmask 1041409   ;;  %vm888_vm2 = vcmask 1042434  }
  0x68   : > { %v1685_v3 = vld [vmem:[#allocation11] sm:$0xff]  ;;  %v2577_v4 = vld [vmem:[#allocation6] sm:$0xff]  ;;  %v2579_v5 = vld [vmem:[#allocation8] sm:$0xff]  ;;  %708 = vmatpush.bf16.msra.mxu2 %v1684_v0  ;;  %769 = vmatpush.bf16.msra.mxu0 %v1686_v1  ;;  %vm890_vm3 = vcmask 1043459   ;;  %vm892_vm4 = vcmask 1044484   ;;  %vm894_vm5 = vcmask 1045509  }
  0x69   : > { %v2581_v6 = vld [vmem:[#allocation8 + $0x8] sm:$0xff]  ;;  %v670_v7 = vpack.c.bf16 %v2579_v5, %v2579_v5  ;;  %v2585_v8 = vld [vmem:[#allocation8 + $0x20] sm:$0xff]  ;;  %1697 = vmatpush.bf16.msra.mxu1 %v1686_v1  ;;  %v2597_v14 = vpack.c.bf16 %v2577_v4, %v2577_v4  ;;  %v2603_v20 = vld [vmem:[#allocation8 + $0x10] sm:$0xff]  ;;  %vm896_vm6 = vcmask 1046534   ;;  %vm898_vm7 = vcmask 1047559  }
  0x6a   : > { %v2587_v9 = vld [vmem:[#allocation8 + $0x28] sm:$0xff]  ;;  %v671_v10 = vpack.c.bf16 %v2581_v6, %v2581_v6  ;;  %v674_v11 = vpack.c.bf16 %v2585_v8, %v2585_v8  ;;  %v2605_v21 = vld [vmem:[#allocation8 + $0x18] sm:$0xff]  ;;  %v2607_v22 = vld [vmem:[#allocation8 + $0x30] sm:$0xff]  ;;  %v672_v24 = vpack.c.bf16 %v2603_v20, %v2603_v20  ;;  %vm901_vm8 = vcmask 64512  }
  0x6b   : > { %v675_v12 = vpack.c.bf16 %v2587_v9, %v2587_v9  ;;  %v727_v13 = vunpack.c.l.b16 %v670_v7  ;;  %v2609_v23 = vld [vmem:[#allocation8 + $0x38] sm:$0xff]  ;;  %v673_v25 = vpack.c.bf16 %v2605_v21, %v2605_v21  ;;  %v676_v26 = vpack.c.bf16 %v2607_v22, %v2607_v22  ;;  %v1846_v36 = vld [vmem:[%s2848_s5] ss:$0 sm:$0xff] }
  0x6c   : > { %v728_v15 = vunpack.c.l.b16 %v671_v10  ;;  %v731_v16 = vunpack.c.l.b16 %v674_v11  ;;  %709 = vmatpush.bf16.msra.mxu2 %v1683_v2  ;;  %770 = vmatpush.bf16.msra.mxu0 %v1685_v3  ;;  %v677_v27 = vpack.c.bf16 %v2609_v23, %v2609_v23  ;;  %v729_v28 = vunpack.c.l.b16 %v672_v24  ;;  %v1847_v59 = vld [vmem:[%s2804_s6] ss:$0 sm:$0xff] }
  0x6d   : > { %v732_v17 = vunpack.c.l.b16 %v675_v12  ;;  %1698 = vmatpush.bf16.msra.mxu1 %v1685_v3  ;;  %v730_v29 = vunpack.c.l.b16 %v673_v25  ;;  %v733_v30 = vunpack.c.l.b16 %v676_v26  ;;  %vm1199_vm9 = vcmask 130048  }
  0x6e   : > { %v735_v18 = vpack.c.b16 %v728_v15, %v727_v13  ;;  %v734_v31 = vunpack.c.l.b16 %v677_v27  ;;  %vm1325_vm14 = vcmask 523264   ;;  %vm1328_vm15 = vcmask 650240  }
  0x6f   : > { %v737_v19 = vpack.c.b16 %v732_v17, %v731_v16  ;;  %1619 = vmatmul.msk.bf16.vlgmr.msra.gmra.mxu2 %vm698_vm0, %v2597_v14  ;;  %v736_v32 = vpack.c.b16 %v730_v29, %v729_v28 }
  0x70   : > { %1628 = vmatmul.msk.bf16.vlgmr.msra.gmra.mxu0 %vm698_vm0, %v735_v18  ;;  %v738_v33 = vpack.c.b16 %v734_v31, %v733_v30 }
  0x71   : > { %1630 = vmatmul.msk.bf16.vlgmr.msra.gmra.mxu1 %vm698_vm0, %v737_v19 }
  0x80   : > { %1629 = vmatmul.msk.bf16.gmra.mxu0 %vm698_vm0, %v736_v32 }
  0x81   : > { %1631 = vmatmul.msk.bf16.gmra.mxu1 %vm698_vm0, %v738_v33 }
  0xed   : > { %v772_v34 = vpop.f32.mrf.mxu0 }
  0xee   : > { %v782_v35 = vpop.f32.mrf.mxu1 }
  0xf2   : > { %v711_v37 = vpop.f32.mrf.mxu2 }
  0xf3   : > { %v712_v38 = vadd.f32 %v1846_v36, %v711_v37 }
  0xf5   : > { %v774_v39 = vpop.f32.mrf.mxu0  ;;  %v793_v40 = vrot.slane %v712_v38, 1  ;;  %v797_v42 = vrot.slane %v712_v38, 5  ;;  %v794_v43 = vrot.slane %v712_v38, 2  ;;  %v800_v44 = vperm.slane %v712_v38, 0 }
  0xf6   : > { %v784_v41 = vpop.f32.mrf.mxu1  ;;  %v796_v45 = vrot.slane %v712_v38, 4  ;;  %v798_v53 = vrot.slane %v712_v38, 6  ;;  %v795_v61 = vrot.slane %v712_v38, 3  ;;  %v799_v0 = vrot.slane %v712_v38, 7 }
  0xf7   : > { %v801_v46 = vperm.slane %v793_v40, 0  ;;  %v816_v47 = vadd.f32 %v800_v44, %v772_v34  ;;  %v805_v49 = vperm.slane %v797_v42, 0  ;;  %v802_v50 = vperm.slane %v794_v43, 0 }
  0xf8   : > { %v804_v48 = vperm.slane %v796_v45, 0  ;;  %v806_v60 = vperm.slane %v798_v53, 0  ;;  %v803_v7 = vperm.slane %v795_v61, 0  ;;  %v807_v17 = vperm.slane %v799_v0, 0 }
  0xf9   : > { %v817_v51 = vadd.f32 %v801_v46, %v774_v39  ;;  %1850 = vtanh.f32 %v816_v47  ;;  %v821_v56 = vadd.f32 %v805_v49, %v784_v41  ;;  %v876_v41 = vlaneseq }
  0xfa   : > { %v713_v52 = vpop.f32.mrf.mxu2  ;;  %v820_v54 = vadd.f32 %v804_v48, %v782_v35 }
  0xfb   : > { %v2635_v44 = vand.u32 127, %v876_v41 }
  0xfc   : > { %1852 = vtanh.f32 %v820_v54 }
  0xfd   : > { %v777_v55 = vpop.f32.mrf.mxu0  ;;  %1854 = vtanh.f32 %v817_v51 }
  0xfe   : > { %v818_v57 = vadd.f32 %v802_v50, %v777_v55  ;;  %v787_v58 = vpop.f32.mrf.mxu1 }
  0xff   : > { %v1851_v62 = vpop.eup %1850  ;;  %v822_v1 = vadd.f32 %v806_v60, %v787_v58 }
 0x100   : > { %1856 = vtanh.f32 %v818_v57  ;;  %v836_v63 = vmul.f32 %v1851_v62, %v1847_v59 }
 0x101   : > { %1858 = vtanh.f32 %v821_v56 }
 0x102   : > { %v1853_v2 = vpop.eup %1852  ;;  %v844_v3 = vsel %vm698_vm0, %v836_v63, 0.0  ;;  %1860 = vtanh.f32 %v822_v1 }
 0x103   : > { %v1855_v10 = vpop.eup %1854  ;;  %845 = vadd.xlane.f32.xlu0 %v844_v3  ;;  %v840_v12 = vmul.f32 %v1853_v2, %v1847_v59  ;;  %v2293_v2 = vmov 0  }
 0x104   : > { %v837_v26 = vmul.f32 %v1855_v10, %v1847_v59  ;;  %1845 = vset.pattern.permute.xlu2 %v2293_v2  ;;  %1844 = vset.pattern.permute.xlu1 %v2293_v2 }
 0x105   : > { %v779_v11 = vpop.f32.mrf.mxu0  ;;  %v856_v18 = vsel %vm698_vm0, %v840_v12, 0.0  ;;  %1843 = vset.pattern.permute.xlu0 %v2293_v2 }
 0x106   : > { %v1857_v13 = vpop.eup %1856  ;;  %v819_v15 = vadd.f32 %v803_v7, %v779_v11  ;;  %v789_v16 = vpop.f32.mrf.mxu1  ;;  %857 = vadd.xlane.f32.xlu2 %v856_v18  ;;  %v847_v29 = vsel %vm698_vm0, %v837_v26, 0.0 }
 0x107   : > { %v838_v19 = vmul.f32 %v1857_v13, %v1847_v59  ;;  %v1859_v24 = vpop.eup %1858  ;;  %v823_v25 = vadd.f32 %v807_v17, %v789_v16 }
 0x108   : > { %1862 = vtanh.f32 %v819_v15  ;;  %v841_v28 = vmul.f32 %v1859_v24, %v1847_v59  ;;  %v1861_v30 = vpop.eup %1860 }
 0x109   : > { %v850_v27 = vsel %vm698_vm0, %v838_v19, 0.0  ;;  %1864 = vtanh.f32 %v823_v25  ;;  %v842_v34 = vmul.f32 %v1861_v30, %v1847_v59 }
 0x10a   : > { %851 = vadd.xlane.f32.xlu1 %v850_v27  ;;  %v859_v32 = vsel %vm698_vm0, %v841_v28, 0.0 }
 0x10b   : > { %848 = vadd.xlane.f32.xlu0 %v847_v29  ;;  %v862_v37 = vsel %vm698_vm0, %v842_v34, 0.0 }
 0x10e   : > { %v1863_v31 = vpop.eup %1862  ;;  %860 = vadd.xlane.f32.xlu2 %v859_v32 }
 0x10f   : > { %v839_v33 = vmul.f32 %v1863_v31, %v1847_v59  ;;  %v1865_v36 = vpop.eup %1864 }
 0x110   : > { %v843_v38 = vmul.f32 %v1865_v36, %v1847_v59 }
 0x111   : > { %v853_v35 = vsel %vm698_vm0, %v839_v33, 0.0 }
 0x112   : > { %854 = vadd.xlane.f32.xlu1 %v853_v35  ;;  %v865_v39 = vsel %vm698_vm0, %v843_v38, 0.0 }
 0x113   : > { %863 = vadd.xlane.f32.xlu0 %v862_v37 }
 0x11a   : > { %866 = vadd.xlane.f32.xlu1 %v865_v39 }
 0x176   : > { %v846_v40 = vpop.xlane.xlu0 %845 }
 0x177   : > { %v878_v47 = vperm.slane %v846_v40, %v2635_v44 }
 0x179   : > { %v858_v42 = vpop.xlane.xlu2 %857 }
 0x17a   : > { %v882_v52 = vperm.slane %v858_v42, %v2635_v44 }
 0x17d   : > { %v852_v43 = vpop.xlane.xlu1 %851 }
 0x17e   : > { %v849_v45 = vpop.xlane.xlu0 %848  ;;  %v880_v49 = vperm.slane %v852_v43, %v2635_v44 }
 0x17f   : > { %v879_v46 = vperm.slane %v849_v45, %v2635_v44 }
 0x181   : > { %v887_v48 = vsel %vm886_vm1, %v879_v46, %v878_v47  ;;  %v861_v53 = vpop.xlane.xlu2 %860 }
 0x182   : > { %v889_v54 = vsel %vm888_vm2, %v880_v49, %v887_v48  ;;  %v883_v58 = vperm.slane %v861_v53, %v2635_v44 }
 0x185   : > { %v855_v50 = vpop.xlane.xlu1 %854 }
 0x186   : > { %v881_v51 = vperm.slane %v855_v50, %v2635_v44  ;;  %v864_v56 = vpop.xlane.xlu0 %863 }
 0x187   : > { %v884_v59 = vperm.slane %v864_v56, %v2635_v44 }
 0x188   : > { %v891_v55 = vsel %vm890_vm3, %v881_v51, %v889_v54 }
 0x189   : > { %v893_v57 = vsel %vm892_vm4, %v882_v52, %v891_v55 }
 0x18a   : > { %v895_v60 = vsel %vm894_vm5, %v883_v58, %v893_v57 }
 0x18b   : > { %v897_v63 = vsel %vm896_vm6, %v884_v59, %v895_v60 }
 0x18d   : > { %v867_v61 = vpop.xlane.xlu1 %866 }
 0x18e   : > { %v885_v62 = vperm.slane %v867_v61, %v2635_v44 }
 0x190   : > { %v899_v0 = vsel %vm898_vm7, %v885_v62, %v897_v63 }
 0x191   : > { %v902_v1 = vsel %vm901_vm8, %v899_v0, -inf }
 0x192   : > { %903 = vmax.xlane.f32.xlu2 %v902_v1 }
 0x205   : > { %v904_v3 = vpop.xlane.xlu2 %903 }
 0x206   : > { %v908_v7 = vperm.slane %v904_v3, 2  ;;  %v907_v10 = vperm.slane %v904_v3, 1  ;;  %v906_v11 = vperm.slane %v904_v3, 0  ;;  %v909_v16 = vperm.slane %v904_v3, 3 }
 0x207   : > { %v910_v17 = vperm.slane %v904_v3, 4  ;;  %v913_v18 = vperm.slane %v904_v3, 7  ;;  %v911_v30 = vperm.slane %v904_v3, 5  ;;  %v912_v32 = vperm.slane %v904_v3, 6 }
 0x208   : > { %v924_v12 = vsub.f32 %v852_v43, %v908_v7  ;;  %v923_v13 = vsub.f32 %v849_v45, %v907_v10  ;;  %v922_v15 = vsub.f32 %v846_v40, %v906_v11  ;;  %v925_v26 = vsub.f32 %v855_v50, %v909_v16  ;;  %v1691_v16 = vld [vmem:[#allocation15 + $0x8] sm:$0xff] }
 0x209   : > { %v926_v27 = vsub.f32 %v858_v42, %v910_v17  ;;  %v929_v28 = vsub.f32 %v867_v61, %v913_v18  ;;  %v927_v37 = vsub.f32 %v861_v53, %v911_v30  ;;  %v928_v38 = vsub.f32 %v864_v56, %v912_v32  ;;  %v1690_v18 = vld [vmem:[#allocation15] sm:$0xff] }
 0x20a   : > { %v934_v19 = vmul.f32 1.442695, %v924_v12  ;;  %v932_v24 = vmul.f32 1.442695, %v923_v13  ;;  %v930_v25 = vmul.f32 1.442695, %v922_v15 }
 0x20b   : > { %v936_v29 = vmul.f32 1.442695, %v925_v26  ;;  %v938_v31 = vmul.f32 1.442695, %v926_v27  ;;  %v944_v34 = vmul.f32 1.442695, %v929_v28 }
 0x20c   : > { %1866 = vpow2.f32 %v934_v19  ;;  %v940_v39 = vmul.f32 1.442695, %v927_v37  ;;  %v942_v40 = vmul.f32 1.442695, %v928_v38  ;;  %v1687_v13 = vld [vmem:[#allocation12] sm:$0xff]  ;;  %v2684_v15 = vld [vmem:[#allocation3] sm:$0xff] }
 0x20d   : > { %1868 = vpow2.f32 %v932_v24  ;;  %v668_v17 = vpack.c.bf16 %v2684_v15, %v2684_v15  ;;  %1210 = vmatpush.bf16.msra.mxu3 %v1687_v13 }
 0x20e   : > { %1870 = vpow2.f32 %v930_v25 }
 0x20f   : > { %1872 = vpow2.f32 %v936_v29 }
 0x210   : > { %1874 = vpow2.f32 %v938_v31  ;;  %1645 = vmatmul.msk.bf16.vlgmr.msra.gmra.mxu3 %vm1199_vm9, %v668_v17 }
 0x211   : > { %1876 = vpow2.f32 %v944_v34  ;;  %1247 = vmatpush.bf16.msrb.mxu3 %v1691_v16 }
 0x212   : > { %v2653_v33 = vpop.eup %1866  ;;  %1878 = vpow2.f32 %v940_v39 }
 0x213   : > { %v2655_v35 = vpop.eup %1868  ;;  %961 = vperm.xlu2 %1845, %v2653_v33   ;;  %1880 = vpow2.f32 %v942_v40 }
 0x214   : > { %v1871_v36 = vpop.eup %1870  ;;  %958 = vperm.xlu1 %1844, %v2655_v35  }
 0x215   : > { %955 = vperm.xlu0 %1843, %v1871_v36   ;;  %v1873_v41 = vpop.eup %1872  ;;  %1248 = vmatpush.bf16.msrb.mxu3 %v1690_v18 }
 0x216   : > { %v2659_v42 = vpop.eup %1874 }
 0x217   : > { %v2661_v43 = vpop.eup %1876 }
 0x218   : > { %v1879_v45 = vpop.eup %1878 }
 0x219   : > { %v2665_v46 = vpop.eup %1880 }
 0x21b   : > { %964 = vperm.xlu2 %1845, %v1873_v41  }
 0x21c   : > { %967 = vperm.xlu1 %1844, %v2659_v42  }
 0x21d   : > { %976 = vperm.xlu0 %1843, %v2661_v43  }
 0x220   : > { %1654 = vmatmul.msk.bf16.vlgmr.msrb.gmra.mxu3 %vm698_vm0, %v2597_v14 }
 0x223   : > { %970 = vperm.xlu2 %1845, %v1879_v45  }
 0x224   : > { %973 = vperm.xlu1 %1844, %v2665_v46  }
 0x26d   : > { %v962_v47 = vpop.permute.xlu2 %961 }
 0x26e   : > { %v980_v55 = vperm.slane %v962_v47, %v2635_v44 }
 0x275   : > { %v965_v50 = vpop.permute.xlu2 %964 }
 0x276   : > { %v981_v58 = vperm.slane %v965_v50, %v2635_v44 }
 0x27d   : > { %v971_v59 = vpop.permute.xlu2 %970 }
 0x27e   : > { %v983_v63 = vperm.slane %v971_v59, %v2635_v44 }
 0x286   : > { %v959_v48 = vpop.permute.xlu1 %958 }
 0x287   : > { %v956_v49 = vpop.permute.xlu0 %955  ;;  %v979_v51 = vperm.slane %v959_v48, %v2635_v44 }
 0x288   : > { %v978_v52 = vperm.slane %v956_v49, %v2635_v44 }
 0x28a   : > { %v986_v53 = vsel %vm886_vm1, %v979_v51, %v978_v52 }
 0x28b   : > { %v987_v56 = vsel %vm888_vm2, %v980_v55, %v986_v53  ;;  %v1689_v55 = vld [vmem:[#allocation14 + $0x8] sm:$0xff] }
 0x28c   : > { %v988_v60 = vsel %vm890_vm3, %v981_v58, %v987_v56  ;;  %1186 = vmatpush.bf16.msrb.mxu2 %v1689_v55 }
 0x28e   : > { %v968_v54 = vpop.permute.xlu1 %967 }
 0x28f   : > { %v982_v57 = vperm.slane %v968_v54, %v2635_v44  ;;  %v977_v62 = vpop.permute.xlu0 %976 }
 0x290   : > { %v985_v2 = vperm.slane %v977_v62, %v2635_v44 }
 0x291   : > { %v989_v61 = vsel %vm892_vm4, %v982_v57, %v988_v60 }
 0x292   : > { %v990_v3 = vsel %vm894_vm5, %v983_v63, %v989_v61  ;;  %v1688_v61 = vld [vmem:[#allocation14] sm:$0xff] }
 0x293   : > { %1187 = vmatpush.bf16.msrb.mxu2 %v1688_v61 }
 0x296   : > { %v974_v0 = vpop.permute.xlu1 %973 }
 0x297   : > { %v984_v1 = vperm.slane %v974_v0, %v2635_v44 }
 0x299   : > { %v991_v7 = vsel %vm896_vm6, %v984_v1, %v990_v3 }
 0x29a   : > { %v992_v10 = vsel %vm898_vm7, %v985_v2, %v991_v7 }
 0x29b   : > { %v994_v11 = vsel %vm901_vm8, %v992_v10, 0.0 }
 0x29c   : > { %995 = vadd.xlane.f32.xlu2 %v994_v11 }
 0x2b4   : > { %1292 = vrot.lane.b32.xlu2 %v2577_v4, %s2294_s30 }
 0x30f   : > { %v996_v12 = vpop.xlane.xlu2 %995 }
 0x310   : > { %1882 = vrcp.f32 %v996_v12  ;;  %v2708_v12 = vpop.f32.mrf.mxu3 }
 0x316   : > { %v1883_v44 = vpop.eup %1882 }
 0x317   : > { %v1000_v19 = vperm.slane %v1883_v44, 1  ;;  %v999_v24 = vperm.slane %v1883_v44, 0  ;;  %v1002_v27 = vperm.slane %v1883_v44, 3  ;;  %v1001_v28 = vperm.slane %v1883_v44, 2 }
 0x318   : > { %v1004_v31 = vperm.slane %v1883_v44, 5  ;;  %v1003_v32 = vperm.slane %v1883_v44, 4 }
 0x319   : > { %v1016_v25 = vmul.f32 %v2655_v35, %v1000_v19  ;;  %v1015_v26 = vmul.f32 %v1871_v36, %v999_v24  ;;  %v1018_v29 = vmul.f32 %v1873_v41, %v1002_v27  ;;  %v1017_v30 = vmul.f32 %v2653_v33, %v1001_v28 }
 0x31a   : > { %v1020_v34 = vmul.f32 %v1879_v45, %v1004_v31  ;;  %v1019_v37 = vmul.f32 %v2659_v42, %v1003_v32  ;;  %v1006_v35 = vperm.slane %v1883_v44, 7  ;;  %v1005_v36 = vperm.slane %v1883_v44, 6 }
 0x31b   : > { %1030 = vperm.xlu0 %1843, %v1016_v25   ;;  %1025 = vperm.xlu1 %1844, %v1015_v26  }
 0x31c   : > { %v1022_v38 = vmul.f32 %v2661_v43, %v1006_v35  ;;  %v1021_v39 = vmul.f32 %v2665_v46, %v1005_v36  ;;  %v1214_v36 = vpop.f32.mrf.mxu3 }
 0x323   : > { %1040 = vperm.xlu0 %1843, %v1018_v29   ;;  %1035 = vperm.xlu1 %1844, %v1017_v30  }
 0x32b   : > { %1050 = vperm.xlu0 %1843, %v1020_v34   ;;  %1045 = vperm.xlu1 %1844, %v1019_v37  }
 0x333   : > { %1060 = vperm.xlu0 %1843, %v1022_v38   ;;  %1055 = vperm.xlu1 %1844, %v1021_v39  }
 0x38d   : > { %v1031_v33 = vpop.permute.xlu0 %1030  ;;  %v1026_v40 = vpop.permute.xlu1 %1025 }
 0x38e   : > { %v1064_v14 = vmul.f32 %v1031_v33, %v2581_v6  ;;  %v1063_v41 = vmul.f32 %v1026_v40, %v2579_v5 }
 0x390   : > { %v1078_v42 = vsel %vm698_vm0, %v1064_v14, 0.0  ;;  %v1071_v45 = vsel %vm698_vm0, %v1063_v41, 0.0 }
 0x391   : > { %v1079_v47 = vrot.slane %v1078_v42, 4  ;;  %v1072_v43 = vrot.slane %v1071_v45, 4 }
 0x393   : > { %v1080_v48 = vadd.f32 %v1079_v47, %v1078_v42  ;;  %v1073_v46 = vadd.f32 %v1072_v43, %v1071_v45 }
 0x395   : > { %v1081_v49 = vrot.slane %v1080_v48, 2  ;;  %v1074_v50 = vrot.slane %v1073_v46, 2  ;;  %v1041_v51 = vpop.permute.xlu0 %1040  ;;  %v1036_v52 = vpop.permute.xlu1 %1035 }
 0x396   : > { %v1066_v4 = vmul.f32 %v1041_v51, %v2605_v21  ;;  %v1065_v53 = vmul.f32 %v1036_v52, %v2603_v20 }
 0x397   : > { %v1082_v54 = vadd.f32 %v1081_v49, %v1080_v48  ;;  %v1075_v6 = vadd.f32 %v1074_v50, %v1073_v46 }
 0x398   : > { %v1092_v5 = vsel %vm698_vm0, %v1066_v4, 0.0  ;;  %v1085_v56 = vsel %vm698_vm0, %v1065_v53, 0.0  ;;  %v1848_v4 = vld [vmem:[%s2849_s4] ss:$0 sm:$0xff] }
 0x399   : > { %v1083_v57 = vrot.slane %v1082_v54, 1  ;;  %v1076_v58 = vrot.slane %v1075_v6, 1  ;;  %v1093_v59 = vrot.slane %v1092_v5, 4  ;;  %v1086_v60 = vrot.slane %v1085_v56, 4 }
 0x39b   : > { %v1084_v62 = vadd.f32 %v1083_v57, %v1082_v54  ;;  %v1077_v63 = vadd.f32 %v1076_v58, %v1075_v6  ;;  %v1094_v0 = vadd.f32 %v1093_v59, %v1092_v5  ;;  %v1087_v1 = vadd.f32 %v1086_v60, %v1085_v56  ;;  %v1250_v5 = vpop.f32.mrf.mxu3 }
 0x39d   : > { %v1310_v21 = vsel %vm886_vm1, %v1084_v62, %v1077_v63  ;;  %v1095_v20 = vrot.slane %v1094_v0, 2  ;;  %v1051_v2 = vpop.permute.xlu0 %1050  ;;  %v1046_v3 = vpop.permute.xlu1 %1045  ;;  %v1088_v7 = vrot.slane %v1087_v1, 2  ;;  %v1128_v32 = vpack.c.bf16 %v1084_v62, %v1084_v62 }
 0x39e   : > { %v1068_v10 = vmul.f32 %v1051_v2, %v2587_v9  ;;  %v1067_v11 = vmul.f32 %v1046_v3, %v2585_v8  ;;  %v1127_v38 = vpack.c.bf16 %v1077_v63, %v1077_v63  ;;  %v1251_v62 = vadd.f32 %v1848_v4, %v1250_v5 }
 0x39f   : > { %v1096_v13 = vadd.f32 %v1095_v20, %v1094_v0  ;;  %v1089_v16 = vadd.f32 %v1088_v7, %v1087_v1  ;;  %v1150_v46 = vunpack.c.l.b16 %v1128_v32 }
 0x3a0   : > { %v1106_v17 = vsel %vm698_vm0, %v1068_v10, 0.0  ;;  %v1099_v44 = vsel %vm698_vm0, %v1067_v11, 0.0  ;;  %v1149_v49 = vunpack.c.l.b16 %v1127_v38  ;;  %1275 = vrot.lane.b32.xlu1 %v1251_v62, %s2295_s7 }
 0x3a1   : > { %v1097_v18 = vrot.slane %v1096_v13, 1  ;;  %v1107_v19 = vrot.slane %v1106_v17, 4  ;;  %v1100_v24 = vrot.slane %v1099_v44, 4  ;;  %v1090_v25 = vrot.slane %v1089_v16, 1 }
 0x3a2   : > { %v1157_v57 = vsel %vm886_vm1, %v1150_v46, %v1149_v49 }
 0x3a3   : > { %v1098_v26 = vadd.f32 %v1097_v18, %v1096_v13  ;;  %v1108_v27 = vadd.f32 %v1107_v19, %v1106_v17  ;;  %v1101_v28 = vadd.f32 %v1100_v24, %v1099_v44  ;;  %v1091_v29 = vadd.f32 %v1090_v25, %v1089_v16  ;;  %v1252_v44 = vpop.f32.mrf.mxu3 }
 0x3a5   : > { %v1109_v30 = vrot.slane %v1108_v27, 2  ;;  %v1102_v9 = vrot.slane %v1101_v28, 2  ;;  %v1061_v31 = vpop.permute.xlu0 %1060  ;;  %v1056_v8 = vpop.permute.xlu1 %1055  ;;  %v1311_v34 = vsel %vm888_vm2, %v1091_v29, %v1310_v21  ;;  %v1129_v14 = vpack.c.bf16 %v1091_v29, %v1091_v29  ;;  %v1849_v29 = vld [vmem:[%s2850_s16] ss:$0 sm:$0xff] }
 0x3a6   : > { %v1070_v37 = vmul.f32 %v1061_v31, %v2609_v23  ;;  %v1069_v35 = vmul.f32 %v1056_v8, %v2607_v22  ;;  %v1312_v40 = vsel %vm890_vm3, %v1098_v26, %v1311_v34  ;;  %v1130_v51 = vpack.c.bf16 %v1098_v26, %v1098_v26 }
 0x3a7   : > { %v1110_v39 = vadd.f32 %v1109_v30, %v1108_v27  ;;  %v1103_v33 = vadd.f32 %v1102_v9, %v1101_v28  ;;  %v1151_v53 = vunpack.c.l.b16 %v1129_v14 }
 0x3a8   : > { %v1120_v41 = vsel %vm698_vm0, %v1070_v37, 0.0  ;;  %v1113_v42 = vsel %vm698_vm0, %v1069_v35, 0.0  ;;  %v1152_v60 = vunpack.c.l.b16 %v1130_v51 }
 0x3a9   : > { %v1111_v45 = vrot.slane %v1110_v39, 1  ;;  %v1104_v47 = vrot.slane %v1103_v33, 1  ;;  %v1121_v43 = vrot.slane %v1120_v41, 4  ;;  %v1114_v48 = vrot.slane %v1113_v42, 4 }
 0x3aa   : > { %v1158_v0 = vsel %vm888_vm2, %v1151_v53, %v1157_v57 }
 0x3ab   : > { %v1105_v23 = vadd.f32 %v1104_v47, %v1103_v33  ;;  %v1122_v50 = vadd.f32 %v1121_v43, %v1120_v41  ;;  %v1115_v22 = vadd.f32 %v1114_v48, %v1113_v42  ;;  %v1112_v52 = vadd.f32 %v1111_v45, %v1110_v39 }
 0x3ac   : > { %v1159_v10 = vsel %vm890_vm3, %v1152_v60, %v1158_v0 }
 0x3ad   : > { %v1131_v54 = vpack.c.bf16 %v1105_v23, %v1105_v23  ;;  %v1123_v6 = vrot.slane %v1122_v50, 2  ;;  %v1116_v55 = vrot.slane %v1115_v22, 2  ;;  %v1313_v56 = vsel %vm892_vm4, %v1105_v23, %v1312_v40  ;;  %v1293_v23 = vpop.permute.xlu2 %1292 }
 0x3ae   : > { %v1132_v61 = vpack.c.bf16 %v1112_v52, %v1112_v52  ;;  %v1314_v63 = vsel %vm894_vm5, %v1112_v52, %v1313_v56 }
 0x3af   : > { %v1124_v58 = vadd.f32 %v1123_v6, %v1122_v50  ;;  %v1117_v59 = vadd.f32 %v1116_v55, %v1115_v22  ;;  %v1153_v1 = vunpack.c.l.b16 %v1131_v54 }
 0x3b0   : > { %v1154_v7 = vunpack.c.l.b16 %v1132_v61 }
 0x3b1   : > { %v1125_v21 = vrot.slane %v1124_v58, 1  ;;  %v1118_v20 = vrot.slane %v1117_v59, 1  ;;  %v1160_v16 = vsel %vm892_vm4, %v1153_v1, %v1159_v10 }
 0x3b2   : > { %v1161_v25 = vsel %vm894_vm5, %v1154_v7, %v1160_v16 }
 0x3b3   : > { %v1126_v2 = vadd.f32 %v1125_v21, %v1124_v58  ;;  %v1119_v3 = vadd.f32 %v1118_v20, %v1117_v59 }
 0x3b5   : > { %v1134_v11 = vpack.c.bf16 %v1126_v2, %v1126_v2  ;;  %v1133_v13 = vpack.c.bf16 %v1119_v3, %v1119_v3  ;;  %v1315_v17 = vsel %vm896_vm6, %v1119_v3, %v1314_v63 }
 0x3b6   : > { %v1316_v18 = vsel %vm898_vm7, %v1126_v2, %v1315_v17 }
 0x3b7   : > { %v1156_v19 = vunpack.c.l.b16 %v1134_v11  ;;  %v1155_v24 = vunpack.c.l.b16 %v1133_v13 }
 0x3b9   : > { %v1162_v26 = vsel %vm896_vm6, %v1155_v24, %v1161_v25 }
 0x3ba   : > { %v1163_v27 = vsel %vm898_vm7, %v1156_v19, %v1162_v26 }
 0x3bb   : > { %v1164_v28 = vpack.c.b16 %v1163_v27, %v1163_v27 }
 0x3bd   : > { %1640 = vmatmul.msk.bf16.vlgmr.msrb.gmra.mxu2 %vm698_vm0, %v1164_v28 }
 0x440   : > { %v1189_v30 = vpop.f32.mrf.mxu2 }
 0x441   : > { %v1213_v9 = vadd.f32 %v2708_v12, %v1189_v30  ;;  %v1276_v12 = vpop.permute.xlu1 %1275 }
 0x443   : > { %v1220_v31 = vadd.f32 %v1849_v29, %v1213_v9 }
 0x445   : > { %v1254_v8 = vadd.f32 %v1251_v62, %v1220_v31 }
 0x447   : > { %v1655_v32 = vmul.f32 -1.442695, %v1254_v8 }
 0x448   : > { %v1191_v34 = vpop.f32.mrf.mxu2 }
 0x449   : > { %1884 = vpow2.f32 %v1655_v32 }
 0x44f   : > { %v1885_v37 = vpop.eup %1884 }
 0x450   : > { %v1258_v35 = vadd.f32 1.0, %v1885_v37 }
 0x452   : > { %1886 = vrcp.f32 %v1258_v35  ;;  %v1270_v33 = vand.u32 2147483648, %v1258_v35  ;;  %v1268_v14 = vand.u32 2147483647, %v1258_v35  ;;  %vm1264_vm11 = vweird.f32 %v1258_v35 }
 0x454   : > { %v1271_v42 = vor.u32 1.1754944e-38, %v1270_v33  ;;  %vm1269_vm13 = vcmp.eq.f32.partialorder %v1268_v14, 8.507059e+37 }
 0x458   : > { %v1887_v36 = vpop.eup %1886 }
 0x459   : > { %v1260_v38 = vmul.f32 %v1887_v36, %v1258_v35  ;;  %vm1265_vm10 = vweird.f32 %v1887_v36 }
 0x45a   : > { %vm1266_vm12 = vmor %vm1264_vm11, %vm1265_vm10 }
 0x45b   : > { %v1261_v39 = vsub.f32 1.0, %v1260_v38 }
 0x45d   : > { %v1262_v40 = vmul.f32 %v1887_v36, %v1261_v39 }
 0x45f   : > { %v1263_v41 = vadd.f32 %v1887_v36, %v1262_v40 }
 0x461   : > { %v1267_v45 = vsel %vm1266_vm12, %v1887_v36, %v1263_v41 }
 0x462   : > { %v1272_v47 = vsel %vm1269_vm13, %v1271_v42, %v1267_v45 }
 0x463   : > { %v1278_v43 = vmul.f32 %v1276_v12, %v1272_v47  ;;  %v1285_v50 = vsub.f32 1.0, %v1272_v47  ;;  %v1295_v51 = vmul.f32 %v1293_v23, %v1272_v47 }
 0x465   : > { %1280 = vrot.lane.b32.xlu0 %v1278_v43, %s2295_s7 }
 0x4d7   : > { %v1281_v48 = vpop.permute.xlu0 %1280 }
 0x4d8   : > { %v1283_v46 = vadd.f32 %v1281_v48, %v1220_v31 }
 0x4da   : > { %1888 = vtanh.f32 %v1283_v46 }
 0x4e0   : > { %v1889_v49 = vpop.eup %1888 }
 0x4e1   : > { %1287 = vrot.lane.b32.xlu1 %v1889_v49, %s2296_s17 }
 0x4e9   : > { %1317 = vrot.lane.b32.xlu1 %v1316_v18, %s2294_s30 }
 0x553   : > { %v1288_v22 = vpop.permute.xlu1 %1287 }
 0x554   : > { %v1290_v52 = vmul.f32 %v1288_v22, %v1285_v50 }
 0x556   : > { %v1296_v4 = vadd.f32 %v1295_v51, %v1290_v52 }
 0x558   : > { %1298 = vrot.lane.b32.xlu0 %v1296_v4, %s2296_s17 }
 0x55b   : > { %v1318_v54 = vpop.permute.xlu1 %1317 }
 0x560   : > { %1321 = vrot.lane.b32.xlu0 %v2684_v15, %s2295_s7 }
 0x5ca   : > { %v1299_v53 = vpop.permute.xlu0 %1298 }
 0x5cb   : > { %1301 = vst.msk [vmem:[#allocation19] sm:$0xff] %vm698_vm0, %v1299_v53  ;;  %v1324_v6 = vsel %vm698_vm0, %v1299_v53, %v1318_v54 }
 0x5d2   : > { %v1322_v55 = vpop.permute.xlu0 %1321 }
 0x5d3   : > { %v1326_v5 = vsel %vm1325_vm14, %v1324_v6, %v1322_v55 }
 0x5d4   : > { %v1327_v56 = vpack.c.bf16 %v1326_v5, %v1326_v5 }
 0x5d6   : > { %1329 = vst.msk [vmem:[#allocation2] sm:$0xf] %vm1328_vm15, %v1327_v56 }
 0x5d7 PF: > { %v1696_v57 = vld [vmem:[%s2558_s8 + $0x20] sm:$0xff]  ;;  %v1695_v15 = vld [vmem:[%s2558_s8 + $0x18] sm:$0xff]  ;;  %v1694_v58 = vld [vmem:[%s2558_s8 + $0x10] sm:$0xff]  ;;  %vm1375_vm0 = vcmask 654336   ;;  %s2297_s24 = smov [#allocation19]   ;;  %s2851_s15 = sld [smem:[#allocation40_spill]] }
 0x5d8   : > { %1382 = vmatpush.bf16.msra.mxu0 %v1696_v57  ;;  %v1693_v59 = vld [vmem:[%s2558_s8 + $0x8] sm:$0xff]  ;;  %v1692_v60 = vld [vmem:[%s2558_s8] sm:$0xff]  ;;  %s1418_s23 = sshll.u32 %s2297_s24, 4  ;;  %p2852_p4 = scmp.eq.s32.totalorder %s2402_s25, 1  ;;  %s1419_s23 = int_to_ptr.vmem [resolvable:$true] %s1418_s23 }
 0x5d9   : > { %s1678_s4 = sshll.u32 %s2402_s25, 3  ;;  %s2853_s11 = sld [smem:[#allocation39_spill]]  ;;  %v1890_v62 = vld [vmem:[%s652_s0] ss:$0 sm:$0xff] }
 0x5da   : > { %s1406_s24 = sshll.u32 %s2573_s28, 4  ;;  %s1394_s22 = scalar_lea.sflag [#allocation5], %s2555_s3  ;;  %s1407_s24 = int_to_ptr.vmem [resolvable:$true] %s1406_s24 }
 0x5dc   : > { %1383 = vmatpush.bf16.msra.mxu0 %v1695_v15 }
 0x5dd   : > { %v1330_v61 = vld [vmem:[#allocation2] sm:$0xf]  ;;  %s1420_s2 = sshll.u32 %s2851_s15, 4  ;;  %s1421_s2 = int_to_ptr.hbm [resolvable:$true] %s1420_s2 }
 0x5de   : > { %1737 = dma.vmem_to_hbm [thread:$0]  (%p2852_p4), %s1419_s23, 128, %s1421_s2, [#allocation20]  }
 0x5df   : > { %s1404_s29 = scalar_lea.hbm %s2853_s11, %s1678_s4  ;;  %s2209_s26 = scalar_lea.hbm %s2853_s11, 16 }
 0x5e0   : > { %1384 = vmatpush.bf16.msra.mxu0 %v1694_v58  ;;  %s1408_s5 = sshll.u32 %s1404_s29, 4  ;;  %s1409_s5 = int_to_ptr.hbm [resolvable:$true] %s1408_s5 }
 0x5e1   : > { %s2203_s23 = sshra.s32 %s1409_s5, 4  ;;  %s2204_s23 = int_to_ptr.hbm [resolvable:$true] %s2203_s23 }
 0x5e2   : > { %s2205_s30 = scalar_lea.hbm %s2204_s23, 8  ;;  %p2210_p9 = scmp.lt.s32.totalorder %s2204_s23, %s2853_s11 }
 0x5e3   : > { %p2206_p13 = scmp.ne.s32.totalorder %s2204_s23, %s2205_s30  ;;  %p2211_p10 = scmp.lt.s32.totalorder %s2209_s26, %s2205_s30 }
 0x5e4   : > { %1385 = vmatpush.bf16.msra.mxu0 %v1693_v59 }
 0x5e5   : > { %p2207_p0 = pnand %p2206_p13, %p2501_p7  ;;  %p2212_p11 = por %p2211_p10, %p2210_p9 }
 0x5e7   : > { %p2208_p8 = pneg %p2207_p0 }
 0x5e8   : > { %1386 = vmatpush.bf16.msra.mxu0 %v1692_v60 }
 0x5e9   : > { %p2213_p2 = pnand %p2212_p11, %p2208_p8 }
 0x5eb   : > { %1676 = vmatmul.msk.bf16.vlgmr.msra.gmra.mxu0 %vm1375_vm0, %v1330_v61 }
 0x668   : > { %v1388_v63 = vpop.f32.mrf.mxu0 }
 0x669   : > { %v1389_v0 = vadd.f32 %v1890_v62, %v1388_v63 }
 0x66b   : > { %1392 = vst [vmem:[%s2573_s28] sm:$0xff] %v1389_v0 }
 0x66c   : > { %2216 = shalt.err (!%p2213_p2)
}
 0x66d   : > { %1735 = dma.vmem_to_hbm [thread:$0]  (%p2501_p7), %s1407_s24, 128, %s1409_s5, %s1394_s22  }
 0x66e   : > { %p2854_p12 = pmov %p2852_p4 }
 0x670   : > { %v1390_v1 = vpop.f32.mrf.mxu0 }
 0x671   : > { %2258 = dma.done.wait (%p2854_p12), [#allocation20], 128   ;;  %p2855_p6 = pmov %p2852_p4 }
 0x673   : > { %2260 = vsyncadd (%p2855_p6), [#allocation20], 4294967168 }
 0x674 PF: > { %s1437_s3 = sand.u32 1, %s2267_s18   ;;  %p2856_p1 = scmp.ge.s32.totalorder %s2279_s21, 2 }
 0x675   : > { %s1438_s28 = scalar_lea.sflag [#allocation5], %s1437_s3 }
 0x676   : > { %p1771_p3 = pnand %p2856_p1, %p2505_p5 }
 0x678   : > { %p1772_p4 = pneg %p1771_p3 }
 0x67a   : > { %2262 = dma.done.wait (%p1772_p4), %s1438_s28, 128  }
 0x67b   : > { %2264 = vsyncadd (%p1772_p4), %s1438_s28, 4294967168  ;;  %p32_p7 = scmp.ge.s32.totalorder %s2477_s10, 4   ;;  %s2857_s18 = smov %s2271_s19 }
 0x67c   : > { %s2858_s19 = smov %s2275_s20  ;;  %s2859_s20 = smov %s2488_s1 }
 0x67d   : > { %s2860_s21 = smov %s2477_s10  ;;  %34 = sbr.rel (!%p32_p7) target bundleno = 22 (0x16), region = 167 }
 0x682   :  { %1444 = vsyncpa [#allocation4], 1 }
 0x683   :  { %1446 = vsyncpa [#allocation4 + $0x1], 1 }
 0x684   :  { %1447 = vsyncpa [#allocation7], 1 }
 0x685   :  { %1448 = vsyncpa [#allocation10], 1 }
 0x686   :  { %1449 = vsyncpa [#allocation13], 1 }
 0x687   :  { %1450 = vsyncpa [#allocation16], 1 }
 0x688   :  { %1451 = vsyncpa [#allocation5], 1 }
 0x689   :  { %1453 = vsyncpa [#allocation5 + $0x1], 1 }
 0x68a   :  { %1454 = vsyncpa [#allocation20], 1 }

</bundles_post_ra>
